<compile_context>
chip_gen: v5e
topology: v5e:2x2
jax: 0.10.0
libtpu: 0.0.40
codegen_flags: <defaults>
</compile_context>

<pallas_src>
import math

import jax
import jax.numpy as jnp
from jax.experimental import pallas as pl
from jax.experimental.pallas import tpu as pltpu


def _gelu_exact(x):
    # PyTorch nn.GELU() default = exact erf formulation.
    return 0.5 * x * (1.0 + jax.lax.erf(x * (1.0 / math.sqrt(2.0))))


def _round_up(n, m):
    return ((n + m - 1) // m) * m


def data_embedding_kernel(x_ref, w1_ref, b1_ref, w2_ref, b2_ref,
                          wc_ref, bc_ref, o_ref):
    # x_ref: (TM, Fp) tile of the flattened (M, Fp) input (last block may be ragged).
    cd = w1_ref.dtype            # matmul input dtype (f32 default, bf16 optional)
    x = x_ref[...]

    # feature interaction: Linear(F,F) -> GELU -> Linear(F,F), f32 accumulation
    h = jnp.dot(x, w1_ref[...], preferred_element_type=jnp.float32) + b1_ref[...]
    h = _gelu_exact(h)
    h = jnp.dot(h.astype(cd), w2_ref[...],
                preferred_element_type=jnp.float32) + b2_ref[...]

    # residual add (in f32)
    xi = x.astype(jnp.float32) + h

    # kernel_size=1 Conv1d == linear projection F -> D
    y = jnp.dot(xi.astype(cd), wc_ref[...],
                preferred_element_type=jnp.float32) + bc_ref[...]
    o_ref[...] = y.astype(o_ref.dtype)


def prepare_params(params, *, lane=128, compute_dtype=jnp.float32):
    """Pad weights once (hoisted out of the per-call path).

    Zero padding is exact: padded weight rows/cols and bias lanes are 0 and
    GELU(0) = 0, so padded lanes stay 0 end-to-end.
    Set compute_dtype=jnp.bfloat16 for the bf16-MXU path on v6e/v7x (numerics
    then diverge from the f32 PyTorch reference).
    """
    w1, b1, w2, b2, wc, bc = params
    F = w1.shape[0]
    Fp = _round_up(F, lane)
    pF = Fp - F
    w1p = jnp.pad(w1, ((0, pF), (0, pF))).astype(compute_dtype)
    b1p = jnp.pad(b1, ((0, 0), (0, pF)))                       # biases stay f32
    w2p = jnp.pad(w2, ((0, pF), (0, pF))).astype(compute_dtype)
    b2p = jnp.pad(b2, ((0, 0), (0, pF)))
    wcp = jnp.pad(wc, ((0, pF), (0, 0))).astype(compute_dtype)  # output dim D unpadded
    return (w1p, b1p, w2p, b2p, wcp, bc)


def data_embedding(x, prepared, *, tile_rows=256):
    """x: (B, S, F) float32 -> (B, S, D) float32.  `prepared` = prepare_params(params)."""
    B, S, F = x.shape
    w1p, b1p, w2p, b2p, wcp, bc = prepared
    Fp = w1p.shape[0]
    D = wcp.shape[1]
    M = B * S

    # Row tile: clamp to the problem (avoid computing mostly-padding tiles for
    # small B*S) and keep >= 2 grid steps so v7x's two TensorCores both get work.
    tile_rows = max(8, min(_round_up(tile_rows, 8), _round_up(pl.cdiv(M, 2), 8)))
    grid = (pl.cdiv(M, tile_rows),)   # ragged last block; OOB rows masked on store

    x2d = x.reshape(M, F)
    if Fp != F:
        # Lane padding with zeros is exact (see prepare_params).
        x2d = jnp.pad(x2d, ((0, 0), (0, Fp - F)))
    if x2d.dtype != w1p.dtype:
        x2d = x2d.astype(w1p.dtype)   # bf16 MXU path

    # Generation-aware scoped-VMEM budget (single-buffered weights, double-buffered
    # streamed tiles, f32 intermediates), ~25% headroom, clamped to 75% of physical.
    try:
        phys_vmem = pltpu.get_tpu_info().vmem_capacity_bytes
    except Exception:
        phys_vmem = 64 * 1024 * 1024   # safe lower bound on every generation
    wbytes = jnp.dtype(w1p.dtype).itemsize
    xbytes = jnp.dtype(x2d.dtype).itemsize
    needed = (wbytes * (2 * Fp * Fp + Fp * D) + 4 * (2 * Fp + D)   # weights/biases (1-buf)
              + 2 * (xbytes * tile_rows * Fp + 4 * tile_rows * D)  # x/out tiles (2-buf)
              + 2 * 4 * tile_rows * Fp)                            # f32 intermediates h, xi
    # NOTE: if 1.25*needed exceeds the clamp (huge F, esp. v7x 64 MiB), the F axis
    # should be tiled with a K-reduction grid axis + f32 accumulator scratch.
    vmem_limit = int(min(0.75 * phys_vmem, max(1.25 * needed, 32 * 1024 * 1024)))

    single = pl.Buffered(1)   # constant index_map -> resident; no need to double-buffer

    out = pl.pallas_call(
        data_embedding_kernel,
        out_shape=jax.ShapeDtypeStruct((M, D), x.dtype),
        grid_spec=pltpu.PrefetchScalarGridSpec(
            num_scalar_prefetch=0,
            grid=grid,
            in_specs=[
                pl.BlockSpec((tile_rows, Fp), lambda i: (i, 0)),                 # x tile
                pl.BlockSpec((Fp, Fp), lambda i: (0, 0), pipeline_mode=single),  # W1^T
                pl.BlockSpec((1, Fp), lambda i: (0, 0), pipeline_mode=single),   # b1
                pl.BlockSpec((Fp, Fp), lambda i: (0, 0), pipeline_mode=single),  # W2^T
                pl.BlockSpec((1, Fp), lambda i: (0, 0), pipeline_mode=single),   # b2
                pl.BlockSpec((Fp, D), lambda i: (0, 0), pipeline_mode=single),   # Wc^T
                pl.BlockSpec((1, D), lambda i: (0, 0), pipeline_mode=single),    # bc
            ],
            out_specs=pl.BlockSpec((tile_rows, D), lambda i: (i, 0)),
        ),
        compiler_params=pltpu.CompilerParams(
            dimension_semantics=("parallel",),
            vmem_limit_bytes=vmem_limit,
        ),
    )(x2d, w1p, b1p, w2p, b2p, wcp, bc)

    return out.reshape(B, S, D)


def init_params(key, model_dim, feature_num):
    """Deterministic synthetic parameters mirroring DataEmbedding.__init__ shapes."""
    k1, k2, k3, k4, k5, k6 = jax.random.split(key, 6)
    F, D = feature_num, model_dim

    # nn.Linear(F, F) default init: U(-1/sqrt(F), 1/sqrt(F)); stored transposed (in, out).
    bound = 1.0 / math.sqrt(F)
    w1 = jax.random.uniform(k1, (F, F), jnp.float32, -bound, bound)
    b1 = jax.random.uniform(k2, (1, F), jnp.float32, -bound, bound)
    w2 = jax.random.uniform(k3, (F, F), jnp.float32, -bound, bound)
    b2 = jax.random.uniform(k4, (1, F), jnp.float32, -bound, bound)

    # Conv1d(F, D, k=1) weight (D, F, 1), kaiming_normal_(fan_in, leaky_relu):
    #   gain = sqrt(2 / (1 + 0.01^2)), std = gain / sqrt(fan_in = F*1)
    gain = math.sqrt(2.0 / (1.0 + 0.01 ** 2))
    std = gain / math.sqrt(F)
    wc = std * jax.random.normal(k5, (F, D), jnp.float32)   # stored as (F, D) = W^T
    # Conv1d bias default: U(-1/sqrt(fan_in), 1/sqrt(fan_in))
    bc = jax.random.uniform(k6, (1, D), jnp.float32, -bound, bound)
    return (w1, b1, w2, b2, wc, bc)


def reference(x, params):
    w1, b1, w2, b2, wc, bc = params
    h = x @ w1 + b1
    h = 0.5 * h * (1.0 + jax.lax.erf(h / jnp.sqrt(2.0)))
    h = h @ w2 + b2
    xi = x + h
    return xi @ wc + bc


if __name__ == "__main__":
    B, S, F, D = 2, 8, 4, 32
    key = jax.random.PRNGKey(0)
    kx, kp = jax.random.split(key)
    x = jax.random.normal(kx, (B, S, F), jnp.float32)
    params = init_params(kp, model_dim=D, feature_num=F)

    # Padding/casting of the weights is done once, outside the per-call path.
    prepared = prepare_params(params)

    fwd = jax.jit(data_embedding)
    y = jax.block_until_ready(fwd(x, prepared))

    y_ref = reference(x, params)
    assert y.shape == (B, S, D)
    assert jnp.allclose(y, y_ref, atol=1e-5, rtol=1e-5)
    print("KERNEL_OK")
</pallas_src>

<mosaic_0001>
module attributes {stable_mosaic.version = 11 : i64} {
  func.func @data_embedding_kernel(%arg0: i32, %arg1: memref<8x128xf32, #tpu.memory_space<vmem>>, %arg2: memref<128x128xf32, #tpu.memory_space<vmem>>, %arg3: memref<1x128xf32, #tpu.memory_space<vmem>>, %arg4: memref<128x128xf32, #tpu.memory_space<vmem>>, %arg5: memref<1x128xf32, #tpu.memory_space<vmem>>, %arg6: memref<128x32xf32, #tpu.memory_space<vmem>>, %arg7: memref<1x32xf32, #tpu.memory_space<vmem>>, %arg8: memref<8x32xf32, #tpu.memory_space<vmem>>) attributes {dimension_semantics = [#tpu.dimension_semantics<parallel>], iteration_bounds = array<i64: 2>, scalar_prefetch = 0 : i64, scratch_operands = 0 : i64, tpu.core_type = #tpu.core_type<tc>, window_params = [{transform_indices = @transform_0, window_bounds = array<i64: 8, 128>}, {pipeline_mode = #tpu.pipeline_mode<synchronous>, transform_indices = @transform_1, window_bounds = array<i64: 128, 128>}, {pipeline_mode = #tpu.pipeline_mode<synchronous>, transform_indices = @transform_2, window_bounds = array<i64: 1, 128>}, {pipeline_mode = #tpu.pipeline_mode<synchronous>, transform_indices = @transform_3, window_bounds = array<i64: 128, 128>}, {pipeline_mode = #tpu.pipeline_mode<synchronous>, transform_indices = @transform_4, window_bounds = array<i64: 1, 128>}, {pipeline_mode = #tpu.pipeline_mode<synchronous>, transform_indices = @transform_5, window_bounds = array<i64: 128, 32>}, {pipeline_mode = #tpu.pipeline_mode<synchronous>, transform_indices = @transform_6, window_bounds = array<i64: 1, 32>}, {transform_indices = @transform_7, window_bounds = array<i64: 8, 32>}]} {
    %c0 = arith.constant 0 : index
    %c0_0 = arith.constant 0 : index
    %0 = vector.load %arg1[%c0, %c0_0] : memref<8x128xf32, #tpu.memory_space<vmem>>, vector<8x128xf32>
    %c0_1 = arith.constant 0 : index
    %c0_2 = arith.constant 0 : index
    %1 = vector.load %arg2[%c0_1, %c0_2] : memref<128x128xf32, #tpu.memory_space<vmem>>, vector<128x128xf32>
    %cst = arith.constant dense<0.000000e+00> : vector<8x128xf32>
    %2 = tpu.matmul %0, %1, %cst {dimension_numbers = #tpu.dot_dimension_numbers<[1], [0], [0], [1], [0, 0, 1, 1], [], []>} : vector<8x128xf32>, vector<128x128xf32>, vector<8x128xf32> -> vector<8x128xf32>
    %c0_3 = arith.constant 0 : index
    %c0_4 = arith.constant 0 : index
    %3 = vector.load %arg3[%c0_3, %c0_4] : memref<1x128xf32, #tpu.memory_space<vmem>>, vector<1x128xf32>
    %4 = vector.broadcast %3 : vector<1x128xf32> to vector<8x128xf32>
    %5 = arith.addf %2, %4 : vector<8x128xf32>
    %cst_5 = arith.constant 5.000000e-01 : f32
    %6 = vector.broadcast %cst_5 : f32 to vector<8x128xf32>
    %7 = arith.mulf %6, %5 : vector<8x128xf32>
    %cst_6 = arith.constant 0.707106769 : f32
    %8 = vector.broadcast %cst_6 : f32 to vector<8x128xf32>
    %9 = arith.mulf %5, %8 : vector<8x128xf32>
    %10 = math.erf %9 : vector<8x128xf32>
    %cst_7 = arith.constant 1.000000e+00 : f32
    %11 = vector.broadcast %cst_7 : f32 to vector<8x128xf32>
    %12 = arith.addf %11, %10 : vector<8x128xf32>
    %13 = arith.mulf %7, %12 : vector<8x128xf32>
    %c0_8 = arith.constant 0 : index
    %c0_9 = arith.constant 0 : index
    %14 = vector.load %arg4[%c0_8, %c0_9] : memref<128x128xf32, #tpu.memory_space<vmem>>, vector<128x128xf32>
    %cst_10 = arith.constant dense<0.000000e+00> : vector<8x128xf32>
    %15 = tpu.matmul %13, %14, %cst_10 {dimension_numbers = #tpu.dot_dimension_numbers<[1], [0], [0], [1], [0, 0, 1, 1], [], []>} : vector<8x128xf32>, vector<128x128xf32>, vector<8x128xf32> -> vector<8x128xf32>
    %c0_11 = arith.constant 0 : index
    %c0_12 = arith.constant 0 : index
    %16 = vector.load %arg5[%c0_11, %c0_12] : memref<1x128xf32, #tpu.memory_space<vmem>>, vector<1x128xf32>
    %17 = vector.broadcast %16 : vector<1x128xf32> to vector<8x128xf32>
    %18 = arith.addf %15, %17 : vector<8x128xf32>
    %19 = arith.addf %0, %18 : vector<8x128xf32>
    %c0_13 = arith.constant 0 : index
    %c0_14 = arith.constant 0 : index
    %20 = vector.load %arg6[%c0_13, %c0_14] : memref<128x32xf32, #tpu.memory_space<vmem>>, vector<128x32xf32>
    %cst_15 = arith.constant dense<0.000000e+00> : vector<8x32xf32>
    %21 = tpu.matmul %19, %20, %cst_15 {dimension_numbers = #tpu.dot_dimension_numbers<[1], [0], [0], [1], [0, 0, 1, 1], [], []>} : vector<8x128xf32>, vector<128x32xf32>, vector<8x32xf32> -> vector<8x32xf32>
    %c0_16 = arith.constant 0 : index
    %c0_17 = arith.constant 0 : index
    %22 = vector.load %arg7[%c0_16, %c0_17] : memref<1x32xf32, #tpu.memory_space<vmem>>, vector<1x32xf32>
    %23 = vector.broadcast %22 : vector<1x32xf32> to vector<8x32xf32>
    %24 = arith.addf %21, %23 : vector<8x32xf32>
    %c0_18 = arith.constant 0 : index
    %c0_19 = arith.constant 0 : index
    %25 = vector.load %arg8[%c0_18, %c0_19] : memref<8x32xf32, #tpu.memory_space<vmem>>, vector<8x32xf32>
    tpu.vector_store %arg8[%c0_18, %c0_19], %24 {strides = array<i32>} : memref<8x32xf32, #tpu.memory_space<vmem>>, vector<8x32xf32>,
    return
  }
  func.func @transform_0(%arg0: i32) -> (i32, i32) {
    %c0_i32 = arith.constant 0 : i32
    %c0_i32_0 = arith.constant 0 : i32
    return %arg0, %c0_i32 : i32, i32
  }
  func.func @transform_1(%arg0: i32) -> (i32, i32) {
    %c0_i32 = arith.constant 0 : i32
    %c0_i32_0 = arith.constant 0 : i32
    %c0_i32_1 = arith.constant 0 : i32
    return %c0_i32, %c0_i32_0 : i32, i32
  }
  func.func @transform_2(%arg0: i32) -> (i32, i32) {
    %c0_i32 = arith.constant 0 : i32
    %c0_i32_0 = arith.constant 0 : i32
    %c0_i32_1 = arith.constant 0 : i32
    return %c0_i32, %c0_i32_0 : i32, i32
  }
  func.func @transform_3(%arg0: i32) -> (i32, i32) {
    %c0_i32 = arith.constant 0 : i32
    %c0_i32_0 = arith.constant 0 : i32
    %c0_i32_1 = arith.constant 0 : i32
    return %c0_i32, %c0_i32_0 : i32, i32
  }
  func.func @transform_4(%arg0: i32) -> (i32, i32) {
    %c0_i32 = arith.constant 0 : i32
    %c0_i32_0 = arith.constant 0 : i32
    %c0_i32_1 = arith.constant 0 : i32
    return %c0_i32, %c0_i32_0 : i32, i32
  }
  func.func @transform_5(%arg0: i32) -> (i32, i32) {
    %c0_i32 = arith.constant 0 : i32
    %c0_i32_0 = arith.constant 0 : i32
    %c0_i32_1 = arith.constant 0 : i32
    return %c0_i32, %c0_i32_0 : i32, i32
  }
  func.func @transform_6(%arg0: i32) -> (i32, i32) {
    %c0_i32 = arith.constant 0 : i32
    %c0_i32_0 = arith.constant 0 : i32
    %c0_i32_1 = arith.constant 0 : i32
    return %c0_i32, %c0_i32_0 : i32, i32
  }
  func.func @transform_7(%arg0: i32) -> (i32, i32) {
    %c0_i32 = arith.constant 0 : i32
    %c0_i32_0 = arith.constant 0 : i32
    return %arg0, %c0_i32 : i32, i32
  }
}

</mosaic_0001>

<bundles_post_ra>
// kernel: data_embedding.1
= control target key start
LH: loop header
LB: loop body
LE: loop exit
PB: predicated region body
PF: predicated region fallthrough
CT: control target
= control target key end

     0   :  { %12 = vsyncpa [#allocation3], 0  ;;  %s970_s0 = inlined_call_operand.vmem [shape: f32[16,128], index: 0, kind: input, shape index: {}]   ;;  %s971_s1 = inlined_call_operand.vmem [shape: f32[128,128], index: 1, kind: input, shape index: {}]   ;;  %s972_s2 = inlined_call_operand.vmem [shape: f32[1,128], index: 2, kind: input, shape index: {}]   ;;  %s973_s3 = inlined_call_operand.hbm [shape: f32[128,128], index: 3, kind: input, shape index: {}]   ;;  %s974_s4 = inlined_call_operand.vmem [shape: f32[1,128], index: 4, kind: input, shape index: {}]   ;;  %s975_s5 = inlined_call_operand.vmem [shape: f32[128,32], index: 5, kind: input, shape index: {}]   ;;  %s976_s6 = inlined_call_operand.vmem [shape: f32[1,32], index: 6, kind: input, shape index: {}]   ;;  %s977_s7 = inlined_call_operand.hbm [shape: f32[16,32], index: 7, kind: output, shape index: {}]  }
   0x1   :  { %13 = vsyncpa [#allocation4], 0 }
   0x2   :  { %15 = vsyncpa [#allocation4 + $0x1], 0  ;;  %s757_s24 = smov 0   ;;  %s759_s25 = smov 0  }
   0x3   :  { %s761_s26 = smov 0   ;;  %s763_s27 = smov 0  }
   0x4 LB: > { %s778_s28 = sadd.s32 4294967295, %s712_s27   ;;  %s546_s29 = sadd.s32 4294967294, %s712_s27   ;;  %s712_s27 = sphi %s763_s27, %s983_s27   ;;  %s708_s26 = sphi %s761_s26, %s982_s26   ;;  %s704_s25 = sphi %s759_s25, %s981_s25   ;;  %s700_s24 = sphi %s757_s24, %s980_s24  }
   0x5   : > { %s782_s30 = sadd.s32 1, %s712_s27   ;;  %s180_s8 = sadd.s32 1, %s708_s26 }
   0x6   : > { %s177_s9 = ssub.s32 %s712_s27, %s782_s30  ;;  %p190_p0 = scmp.ne.s32.totalorder %s708_s26, %s704_s25 }
   0x7   : > { %p178_p1 = scmp.eq.s32.totalorder %s177_s9, 0  ;;  %p191_p2 = scmp.eq.s32.totalorder %s778_s28, 1 }
   0x8   : > { %p196_p3 = scmp.ne.s32.totalorder %s704_s25, %s700_s24  ;;  %p197_p4 = scmp.eq.s32.totalorder %s546_s29, 1 }
   0x9   : > { %s793_s10 = scalar_select %p178_p1, %s708_s26, %s180_s8  }
   0xa   : > { %p795_p5 = por %p191_p2, %p190_p0  ;;  %p799_p6 = por %p197_p4, %p196_p3 }
   0xb   : > { %p547_p7 = scmp.ge.s32.totalorder %s712_s27, 1  ;;  %p204_p8 = scmp.lt.s32.totalorder %s712_s27, 3 }
   0xc   : > { %p573_p9 = scmp.eq.s32.totalorder %s778_s28, 0  ;;  %s221_s15 = sshll.u32 %s973_s3, 4  ;;  %s222_s15 = int_to_ptr.hbm [resolvable:$true] %s221_s15 }
   0xd   : > { %p205_p10 = pnand %p547_p7, %p204_p8  ;;  %s714_s16 = smov [#allocation2]  }
   0xe   : > { %s223_s17 = sshll.u32 %s714_s16, 4  ;;  %s715_s18 = smov 128   ;;  %s224_s17 = int_to_ptr.vmem [resolvable:$true] %s223_s17 }
   0xf   : > { %p565_p11 = pneg %p205_p10  ;;  %s716_s19 = smov 8  }
  0x10   : > { %255 = sbr.rel (%p205_p10) target bundleno = 500 (0x1f4), region = 48 }
  0x11   : > { %p566_p12 = pnand %p573_p9, %p565_p11 }
  0x13   : > { %568 = dma.hbm_to_vmem [thread:$0]  (!%p566_p12), %s222_s15, 2048, %s224_s17, [#allocation3], %s715_s18, %s715_s18, %s716_s19  }
  0x15   : > { %691 = dma.done.wait (%p573_p9), [#allocation3], 2048  }
  0x16   : > { %693 = vsyncadd (%p573_p9), [#allocation3], 4294965248  ;;  %v307_v0 = vld [vmem:[%s971_s1 + $0x78] sm:$0xff]  ;;  %v306_v1 = vld [vmem:[%s971_s1 + $0x70] sm:$0xff]  ;;  %p287_p13 = scmp.lt.s32.totalorder %s778_s28, 1  ;;  %s284_s23 = sand.u32 1, %s704_s25  }
  0x17   : > { %312 = vmatpush.msra.mxu0 %v307_v0  ;;  %v305_v2 = vld [vmem:[%s971_s1 + $0x68] sm:$0xff]  ;;  %v304_v3 = vld [vmem:[%s971_s1 + $0x60] sm:$0xff]  ;;  %v303_v4 = vld [vmem:[%s971_s1 + $0x58] sm:$0xff]  ;;  %s552_s29 = sshll.u32 %s284_s23, 3  ;;  %s556_s8 = sshll.u32 %s778_s28, 3  ;;  %vm457_vm4 = vcmask 261120  }
  0x18   : > { %v302_v5 = vld [vmem:[%s971_s1 + $0x50] sm:$0xff]  ;;  %v301_v6 = vld [vmem:[%s971_s1 + $0x48] sm:$0xff]  ;;  %v300_v7 = vld [vmem:[%s971_s1 + $0x40] sm:$0xff]  ;;  %s288_s14 = scalar_select %p287_p13, %s778_s28, 1 }
  0x19   : > { %313 = vmatpush.msra.mxu0 %v306_v1  ;;  %v299_v8 = vld [vmem:[%s971_s1 + $0x38] sm:$0xff]  ;;  %v298_v9 = vld [vmem:[%s971_s1 + $0x30] sm:$0xff]  ;;  %v297_v10 = vld [vmem:[%s971_s1 + $0x28] sm:$0xff]  ;;  %s470_s15 = scalar_lea.hbm %s977_s7, %s556_s8  ;;  %s286_s17 = scalar_lea.vmem [#allocation5], %s552_s29 }
  0x1a   : > { %v296_v11 = vld [vmem:[%s971_s1 + $0x20] sm:$0xff]  ;;  %v295_v12 = vld [vmem:[%s971_s1 + $0x18] sm:$0xff]  ;;  %s553_s19 = sshll.u32 %s288_s14, 3  ;;  %v294_v13 = vld [vmem:[%s971_s1 + $0x10] sm:$0xff]  ;;  %s472_s18 = sshll.u32 %s286_s17, 4  ;;  %s473_s18 = int_to_ptr.vmem [resolvable:$true] %s472_s18 }
  0x1b   : > { %314 = vmatpush.msra.mxu0 %v305_v2  ;;  %v293_v14 = vld [vmem:[%s971_s1 + $0x8] sm:$0xff]  ;;  %s290_s9 = scalar_lea.vmem %s970_s0, %s553_s19  ;;  %v292_v15 = vld [vmem:[%s971_s1] sm:$0xff]  ;;  %v391_v17 = vld [vmem:[#allocation2 + $0x78] sm:$0xff]  ;;  %s474_s19 = sshll.u32 %s470_s15, 4  ;;  %s475_s19 = int_to_ptr.hbm [resolvable:$true] %s474_s19 }
  0x1c   : > { %v868_v16 = vld [vmem:[%s290_s9] sm:$0xff]  ;;  %396 = vmatpush.msra.mxu1 %v391_v17  ;;  %v390_v18 = vld [vmem:[#allocation2 + $0x70] sm:$0xff]  ;;  %v389_v19 = vld [vmem:[#allocation2 + $0x68] sm:$0xff]  ;;  %s460_s20 = scalar_lea.sflag [#allocation4], %s284_s23  ;;  %s660_s28 = sshra.s32 %s475_s19, 4  ;;  %s661_s28 = int_to_ptr.hbm [resolvable:$true] %s660_s28 }
  0x1d   : > { %315 = vmatpush.msra.mxu0 %v304_v3  ;;  %v388_v20 = vld [vmem:[#allocation2 + $0x60] sm:$0xff]  ;;  %v387_v22 = vld [vmem:[#allocation2 + $0x58] sm:$0xff]  ;;  %v386_v23 = vld [vmem:[#allocation2 + $0x50] sm:$0xff]  ;;  %s662_s21 = scalar_lea.hbm %s661_s28, 8  ;;  %s666_s29 = scalar_lea.hbm %s977_s7, 16 }
  0x1e   : > { %397 = vmatpush.msra.mxu1 %v390_v18  ;;  %v611_v21 = vld [vmem:[%s972_s2] ss:$0 sm:$0xff]  ;;  %v385_v25 = vld [vmem:[#allocation2 + $0x48] sm:$0xff]  ;;  %v383_v29 = vld [vmem:[#allocation2 + $0x38] sm:$0xff]  ;;  %p663_p0 = scmp.ne.s32.totalorder %s661_s28, %s662_s21  ;;  %p667_p3 = scmp.lt.s32.totalorder %s661_s28, %s977_s7 }
  0x1f   : > { %316 = vmatpush.msra.mxu0 %v303_v4  ;;  %v384_v27 = vld [vmem:[#allocation2 + $0x40] sm:$0xff]  ;;  %v382_v31 = vld [vmem:[#allocation2 + $0x30] sm:$0xff]  ;;  %v381_v33 = vld [vmem:[#allocation2 + $0x28] sm:$0xff]  ;;  %p668_p4 = scmp.lt.s32.totalorder %s666_s29, %s662_s21 }
  0x20   : > { %398 = vmatpush.msra.mxu1 %v389_v19  ;;  %v380_v36 = vld [vmem:[#allocation2 + $0x20] sm:$0xff]  ;;  %v379_v39 = vld [vmem:[#allocation2 + $0x18] sm:$0xff]  ;;  %v378_v42 = vld [vmem:[#allocation2 + $0x10] sm:$0xff]  ;;  %p664_p1 = pnand %p663_p0, %p795_p5 }
  0x21   : > { %317 = vmatpush.msra.mxu0 %v302_v5  ;;  %v377_v45 = vld [vmem:[#allocation2 + $0x8] sm:$0xff]  ;;  %v376_v47 = vld [vmem:[#allocation2] sm:$0xff]  ;;  %v432_v51 = vld [vmem:[%s975_s5 + $0x78] sm:$0xff]  ;;  %p669_p7 = por %p668_p4, %p667_p3 }
  0x22   : > { %399 = vmatpush.msra.mxu1 %v388_v20  ;;  %v431_v52 = vld [vmem:[%s975_s5 + $0x70] sm:$0xff]  ;;  %437 = vmatpush.msra.mxu2 %v432_v51  ;;  %v430_v55 = vld [vmem:[%s975_s5 + $0x68] sm:$0xff]  ;;  %v429_v57 = vld [vmem:[%s975_s5 + $0x60] sm:$0xff]  ;;  %p665_p2 = pneg %p664_p1 }
  0x23   : > { %318 = vmatpush.msra.mxu0 %v301_v6  ;;  %v428_v60 = vld [vmem:[%s975_s5 + $0x58] sm:$0xff]  ;;  %v427_v61 = vld [vmem:[%s975_s5 + $0x50] sm:$0xff]  ;;  %v426_v63 = vld [vmem:[%s975_s5 + $0x48] sm:$0xff] }
  0x24   : > { %400 = vmatpush.msra.mxu1 %v387_v22  ;;  %438 = vmatpush.msra.mxu2 %v431_v52  ;;  %v425_v0 = vld [vmem:[%s975_s5 + $0x40] sm:$0xff]  ;;  %v424_v4 = vld [vmem:[%s975_s5 + $0x38] sm:$0xff]  ;;  %v423_v6 = vld [vmem:[%s975_s5 + $0x30] sm:$0xff]  ;;  %p670_p8 = pnand %p669_p7, %p665_p2 }
  0x25   : > { %319 = vmatpush.msra.mxu0 %v300_v7  ;;  %v420_v18 = vld [vmem:[%s975_s5 + $0x18] sm:$0xff] }
  0x26   : > { %401 = vmatpush.msra.mxu1 %v386_v23  ;;  %439 = vmatpush.msra.mxu2 %v430_v55 }
  0x27   : > { %320 = vmatpush.msra.mxu0 %v299_v8 }
  0x28   : > { %402 = vmatpush.msra.mxu1 %v385_v25  ;;  %440 = vmatpush.msra.mxu2 %v429_v57  ;;  %v419_v25 = vld [vmem:[%s975_s5 + $0x10] sm:$0xff] }
  0x29   : > { %321 = vmatpush.msra.mxu0 %v298_v9 }
  0x2a   : > { %403 = vmatpush.msra.mxu1 %v384_v27  ;;  %441 = vmatpush.msra.mxu2 %v428_v60  ;;  %v418_v27 = vld [vmem:[%s975_s5 + $0x8] sm:$0xff] }
  0x2b   : > { %322 = vmatpush.msra.mxu0 %v297_v10 }
  0x2c   : > { %404 = vmatpush.msra.mxu1 %v383_v29  ;;  %442 = vmatpush.msra.mxu2 %v427_v61 }
  0x2d   : > { %323 = vmatpush.msra.mxu0 %v296_v11  ;;  %v422_v11 = vld [vmem:[%s975_s5 + $0x28] sm:$0xff] }
  0x2e   : > { %405 = vmatpush.msra.mxu1 %v382_v31  ;;  %443 = vmatpush.msra.mxu2 %v426_v63 }
  0x2f   : > { %324 = vmatpush.msra.mxu0 %v295_v12 }
  0x30   : > { %406 = vmatpush.msra.mxu1 %v381_v33  ;;  %444 = vmatpush.msra.mxu2 %v425_v0 }
  0x31   : > { %325 = vmatpush.msra.mxu0 %v294_v13  ;;  %v421_v13 = vld [vmem:[%s975_s5 + $0x20] sm:$0xff] }
  0x32   : > { %407 = vmatpush.msra.mxu1 %v380_v36  ;;  %445 = vmatpush.msra.mxu2 %v424_v4 }
  0x33   : > { %326 = vmatpush.msra.mxu0 %v293_v14 }
  0x34   : > { %408 = vmatpush.msra.mxu1 %v379_v39  ;;  %446 = vmatpush.msra.mxu2 %v423_v6 }
  0x35   : > { %327 = vmatpush.msra.mxu0 %v292_v15 }
  0x36   : > { %328 = vmatmul.f32.vlgmr.msra.gmra.mxu0 %v868_v16  ;;  %409 = vmatpush.msra.mxu1 %v378_v42 }
  0x37   : > { %447 = vmatpush.msra.mxu2 %v422_v11 }
  0x38   : > { %410 = vmatpush.msra.mxu1 %v377_v45 }
  0x39   : > { %448 = vmatpush.msra.mxu2 %v421_v13 }
  0x3a   : > { %411 = vmatpush.msra.mxu1 %v376_v47 }
  0x3b   : > { %449 = vmatpush.msra.mxu2 %v420_v18 }
  0x3d   : > { %450 = vmatpush.msra.mxu2 %v419_v25 }
  0x3f   : > { %451 = vmatpush.msra.mxu2 %v418_v27 }
  0xb3   : > { %v329_v24 = vpop.f32.mrf.mxu0 }
  0xb4   : > { %v874_v26 = vadd.f32 %v611_v21, %v329_v24 }
  0xb6   : > { %v877_v28 = vmul.f32 0.70710677, %v874_v26  ;;  %v332_v22 = vmul.f32 0.5, %v874_v26  ;;  %v612_v26 = vld [vmem:[%s974_s4] ss:$0 sm:$0xff] }
  0xb8   : > { %v334_v30 = vmul.f32 %v877_v28, %v877_v28 }
  0xba   : > { %v335_v32 = vmin.f32 %v334_v30, 16.0 }
  0xbc   : > { %v336_v34 = vmul.f32 2.1237322e-06, %v335_v32  ;;  %v347_v35 = vmul.f32 3.8918573e-05, %v335_v32 }
  0xbe   : > { %v337_v37 = vadd.f32 0.00028619796, %v336_v34  ;;  %v348_v38 = vadd.f32 0.001143296, %v347_v35 }
  0xc0   : > { %v338_v40 = vmul.f32 %v337_v37, %v335_v32  ;;  %v349_v41 = vmul.f32 %v348_v38, %v335_v32 }
  0xc2   : > { %v350_v43 = vadd.f32 0.014752088, %v349_v41  ;;  %v339_v44 = vadd.f32 0.0036580483, %v338_v40 }
  0xc4   : > { %v351_v46 = vmul.f32 %v350_v43, %v335_v32  ;;  %v340_v49 = vmul.f32 %v339_v44, %v335_v32 }
  0xc6   : > { %v352_v48 = vadd.f32 0.112945676, %v351_v46  ;;  %v341_v54 = vadd.f32 0.05243302, %v340_v49 }
  0xc8   : > { %v353_v50 = vmul.f32 %v352_v48, %v335_v32  ;;  %v342_v59 = vmul.f32 %v341_v54, %v335_v32 }
  0xca   : > { %v354_v53 = vadd.f32 0.4994258, %v353_v50  ;;  %v343_v62 = vadd.f32 0.18741608, %v342_v59 }
  0xcc   : > { %v355_v56 = vmul.f32 %v354_v53, %v335_v32  ;;  %v344_v2 = vmul.f32 %v343_v62, %v335_v32  ;;  %v613_v32 = vld [vmem:[%s976_s6] ss:$0 sm:$0xff] }
  0xce   : > { %v356_v58 = vadd.f32 1.0, %v355_v56  ;;  %v345_v8 = vadd.f32 1.1283791, %v344_v2 }
  0xd0   : > { %614 = vrcp.f32 %v356_v58  ;;  %v368_v7 = vand.u32 2147483648, %v356_v58  ;;  %v366_v10 = vand.u32 2147483647, %v356_v58  ;;  %vm362_vm1 = vweird.f32 %v356_v58 }
  0xd1   : > { %v346_v15 = vmul.f32 %v345_v8, %v877_v28  ;;  %v417_v28 = vld [vmem:[%s975_s5] sm:$0xff] }
  0xd2   : > { %v369_v14 = vor.u32 1.1754944e-38, %v368_v7  ;;  %vm367_vm3 = vcmp.eq.f32.partialorder %v366_v10, 8.507059e+37  ;;  %452 = vmatpush.msra.mxu2 %v417_v28 }
  0xd6   : > { %v615_v1 = vpop.eup %614 }
  0xd7   : > { %v358_v3 = vmul.f32 %v615_v1, %v356_v58  ;;  %vm363_vm0 = vweird.f32 %v615_v1 }
  0xd8   : > { %vm364_vm2 = vmor %vm362_vm1, %vm363_vm0 }
  0xd9   : > { %v359_v5 = vsub.f32 1.0, %v358_v3 }
  0xdb   : > { %v360_v9 = vmul.f32 %v615_v1, %v359_v5 }
  0xdd   : > { %v361_v12 = vadd.f32 %v615_v1, %v360_v9 }
  0xdf   : > { %v365_v17 = vsel %vm364_vm2, %v615_v1, %v361_v12 }
  0xe0   : > { %v370_v19 = vsel %vm367_vm3, %v369_v14, %v365_v17 }
  0xe1   : > { %v371_v20 = vmul.f32 %v370_v19, %v346_v15 }
  0xe3   : > { %v554_v21 = vclamps-f32 %v371_v20, 1.0 }
  0xe5   : > { %v374_v23 = vadd.f32 1.0, %v554_v21 }
  0xe7   : > { %v375_v24 = vmul.f32 %v374_v23, %v332_v22 }
  0xe9   : > { %412 = vmatmul.f32.vlgmr.msra.gmra.mxu1 %v375_v24 }
 0x166   : > { %v413_v29 = vpop.f32.mrf.mxu1 }
 0x167   : > { %v414_v30 = vadd.f32 %v612_v26, %v413_v29 }
 0x169   : > { %v416_v31 = vadd.f32 %v414_v30, %v868_v16 }
 0x16b   : > { %453 = vmatmul.f32.vlgmr.msra.gmra.mxu2 %v416_v31 }
 0x1ee   : > { %v454_v33 = vpop.f32.mrf.mxu2 }
 0x1ef   : > { %v455_v34 = vadd.f32 %v613_v32, %v454_v33 }
 0x1f1   : > { %458 = vst.msk [vmem:[%s286_s17] sm:$0xff] %vm457_vm4, %v455_v34 }
 0x1f2   : > { %673 = shalt.err (!%p670_p8)
}
 0x1f3   : > { %563 = dma.vmem_to_hbm [thread:$0]  (%p795_p5), %s473_s18, 128, %s475_s19, %s460_s20  }
 0x1f4 PF: > { %p575_p9 = scmp.ge.s32.totalorder %s712_s27, 2  ;;  %s486_s23 = sand.u32 1, %s700_s24  }
 0x1f5   : > { %s487_s15 = scalar_lea.sflag [#allocation4], %s486_s23 }
 0x1f6   : > { %p570_p10 = pnand %p575_p9, %p799_p6 }
 0x1f8   : > { %p571_p11 = pneg %p570_p10 }
 0x1fa   : > { %695 = dma.done.wait (%p571_p11), %s487_s15, 128  }
 0x1fb   : > { %697 = vsyncadd (%p571_p11), %s487_s15, 4294967168  ;;  %p18_p12 = scmp.ge.s32.totalorder %s782_s30, 4   ;;  %s980_s24 = smov %s704_s25 }
 0x1fc   : > { %s981_s25 = smov %s708_s26  ;;  %s982_s26 = smov %s793_s10 }
 0x1fd   : > { %s983_s27 = smov %s782_s30  ;;  %20 = sbr.rel (!%p18_p12) target bundleno = 4 (0x4), region = 88 }
 0x202   :  { %493 = vsyncpa [#allocation3], 1 }
 0x203   :  { %495 = vsyncpa [#allocation3 + $0x1], 1 }
 0x204   :  { %496 = vsyncpa [#allocation4], 1 }
 0x205   :  { %498 = vsyncpa [#allocation4 + $0x1], 1 }

</bundles_post_ra>
